<compile_context>
chip_gen: v7x
topology: tpu7x:2x2x1
jax: 0.10.0
libtpu: 0.0.40
codegen_flags: <defaults>
</compile_context>

<pallas_src>
import functools

import jax
import jax.numpy as jnp
from jax.experimental import pallas as pl
from jax.experimental.pallas import tpu as pltpu

gaussian_steps = {0: 2.0, 1: 1.596, 2: 0.996, 3: 0.586, 4: 0.335, 5: 0.188,
                  6: 0.104, 7: 0.057, 8: 0.031, 15: 1 / 8, 16: 1 / 8}


def _round_up(x, m):
    return (x + m - 1) // m * m


# ---------------------------------------------------------------------------
# Kernel 1: per-branch gaussian quantization + softmax-weighted mixing.
# Tiled along the flattened weight dim so VMEM use is constant for any layer.
#   params_ref: (nb, 3) [step, thr, softmax_w] per branch (SMEM)
#   w_ref:      (nb, CS, 128) chunk of stacked flattened branch weights (VMEM)
#   out_ref:    (CS, 128)     mixed quantized weight chunk (VMEM)
# ---------------------------------------------------------------------------
def mix_quant_weight_kernel(params_ref, w_ref, out_ref, *, nb):
    acc = jnp.zeros(out_ref.shape, jnp.float32)
    for i in range(nb):                      # nb is small & static
        step = params_ref[i, 0]
        thr = params_ref[i, 1]
        sw_i = params_ref[i, 2]
        w = w_ref[i]
        # Same formula as the PyTorch autograd fn (true divide -> identical
        # bin edges): y = (round(x/step + 0.5) - 0.5) * step, clamped to +-thr.
        y = (jnp.round(w / step + 0.5) - 0.5) * step
        y = jnp.clip(y, -thr, thr)
        acc = acc + sw_i * y
    out_ref[...] = acc


# ---------------------------------------------------------------------------
# Kernel 2: fused conv with the kH*kW taps folded into the contraction dim.
# Per grid step: one row-tile of one image x one Cout tile.
#   x_ref:     (Hp, Wp, Cinp)      bf16, whole padded image (resident per n)
#   w_ref:     (kH*kW*Cinp, tn)    bf16 folded weight tile
#   o_ref:     (tM, tn)            f32 output tile (tM = tHo * Wo)
#   patch_ref: (tM, kH*kW*Cinp)    bf16 VMEM scratch (per-tile im2col)
# ---------------------------------------------------------------------------
def conv_fold_kernel(x_ref, w_ref, o_ref, patch_ref, *,
                     kH, kW, tHo, Wo, Cinp, stride):
    r = pl.program_id(2)                              # row-tile index
    row0 = pl.multiple_of(r * (tHo * stride), tHo * stride)
    tM = tHo * Wo
    for kh in range(kH):
        for kw in range(kW):
            t = kh * kW + kw
            if stride == 1:
                xt = x_ref[pl.ds(row0 + kh, tHo), pl.ds(kw, Wo), :]
            else:
                # Strided reads done at the ref level (no value-level gathers).
                xt = x_ref[pl.ds(row0 + kh, tHo, stride),
                           pl.ds(kw, Wo, stride), :]
            patch_ref[:, t * Cinp:(t + 1) * Cinp] = xt.reshape(tM, Cinp)
    # One MXU matmul with K = kH*kW*Cinp, f32 accumulation.
    o_ref[...] = jnp.dot(patch_ref[...], w_ref[...],
                         preferred_element_type=jnp.float32)


def mix_quant_conv2d(x, weights, alpha, bits, stride=1, padding=1):
    """Forward of MixQuantConv2d.

    x:       (N, Cin, H, W)              float32 (NCHW, like PyTorch)
    weights: (nb, Cout, Cin, kH, kW)     per-bit branch conv weights (OIHW)
    alpha:   (nb,)                       mixing logits
    Returns (out NCHW float32, mixed_weight OIHW float32).
    """
    nb, Cout, Cin, kH, kW = weights.shape
    N, _, H, W = x.shape

    # ---- per-branch step / threshold / softmax weight (tiny scalar setup) --
    sw = jax.nn.softmax(alpha)
    # torch.Tensor.std() is the unbiased (ddof=1) std over all elements.
    stds = jnp.stack([jnp.std(weights[i], ddof=1) for i in range(nb)])
    gsteps = jnp.array([gaussian_steps[b] for b in bits], jnp.float32)
    lvls = jnp.array([2.0 ** b / 2.0 for b in bits], jnp.float32)
    step = gsteps * stds
    thr = (lvls - 0.5) * step
    params = jnp.stack([step, thr, sw], axis=-1).astype(jnp.float32)

    # ---- mixed quantized weight via tiled Pallas elementwise kernel --------
    L = Cout * Cin * kH * kW
    S0 = _round_up(pl.cdiv(L, 128), 8)
    CS = min(S0, 512)                        # 512 sublanes/chunk (~85% roofline)
    S = _round_up(S0, CS)
    w_flat = weights.reshape(nb, L)
    w_pad = jnp.zeros((nb, S * 128), jnp.float32).at[:, :L].set(w_flat)
    w_pad = w_pad.reshape(nb, S, 128)

    mixed_pad = pl.pallas_call(
        functools.partial(mix_quant_weight_kernel, nb=nb),
        grid=(S // CS,),
        in_specs=[pl.BlockSpec(memory_space=pltpu.MemorySpace.SMEM),
                  pl.BlockSpec((nb, CS, 128), lambda i: (0, i, 0))],
        out_specs=pl.BlockSpec((CS, 128), lambda i: (i, 0)),
        out_shape=jax.ShapeDtypeStruct((S, 128), jnp.float32),
        compiler_params=pltpu.CompilerParams(
            dimension_semantics=("parallel",)),
    )(params, w_pad)
    mixed_weight = mixed_pad.reshape(-1)[:L].reshape(Cout, Cin, kH, kW)

    # ---- fused conv: NHWC + halo pad + bf16 cast in ONE wrapper pass -------
    Ho = (H + 2 * padding - kH) // stride + 1
    Wo = (W + 2 * padding - kW) // stride + 1
    Wp = W + 2 * padding
    # Lane dim of the activation block. We rely on tap-folding to make the
    # MXU contraction K = kH*kW*Cinp >= 128 for real layers, so no 128-pad
    # of Cin (which would multiply HBM traffic for small-Cin layers).
    Cinp = _round_up(Cin, 8)
    Coutp = _round_up(Cout, 128)
    tn = 256 if Coutp % 256 == 0 else 128    # lane-dense, v7x-friendly tile

    # Spatial row tiling: tM = tHo*Wo output rows per step (~512), tM % 8 == 0.
    TARGET_TM = 512
    tHo = max(1, min(Ho, TARGET_TM // max(Wo, 1)))
    while (tHo * Wo) % 8 != 0:
        tHo += 1
    tM = tHo * Wo
    Hop = _round_up(Ho, tHo)
    n_r = Hop // tHo
    # Padded rows must also cover the (zero) rows read by the last row tile.
    Hp = max(H + 2 * padding, (Hop - 1) * stride + kH)

    x_nhwc = jnp.transpose(x, (0, 2, 3, 1))
    x_pad = jnp.pad(
        x_nhwc,
        ((0, 0), (padding, Hp - H - padding), (padding, padding),
         (0, Cinp - Cin))).astype(jnp.bfloat16)          # bf16 DMA (half traffic)

    # Weight folded to (kH*kW*Cinp, Coutp) bf16, K order = (kh, kw, cin).
    Kfold = kH * kW * Cinp
    w_k = jnp.transpose(mixed_weight, (2, 3, 1, 0))      # (kH, kW, Cin, Cout)
    w_fold = jnp.zeros((kH, kW, Cinp, Coutp), jnp.bfloat16)
    w_fold = w_fold.at[:, :, :Cin, :Cout].set(w_k.astype(jnp.bfloat16))
    w_fold = w_fold.reshape(Kfold, Coutp)

    n_j = Coutp // tn
    x_bytes = N * Hp * Wp * Cinp * 2
    w_bytes = Kfold * Coutp * 2
    o_bytes = N * Hop * Wo * Coutp * 4

    x_blk = (None, Hp, Wp, Cinp)
    w_blk = (Kfold, tn)
    o_blk = (None, tM, tn)
    # Keep the larger operand resident (outermost grid axis changes it least):
    if w_bytes >= x_bytes:
        grid = (n_j, N, n_r)                 # weight read once total
        x_spec = pl.BlockSpec(x_blk, lambda j, n, r: (n, 0, 0, 0))
        w_spec = pl.BlockSpec(w_blk, lambda j, n, r: (0, j))
        o_spec = pl.BlockSpec(o_blk, lambda j, n, r: (n, r, j))
    else:
        grid = (N, n_j, n_r)                 # activation read once total
        x_spec = pl.BlockSpec(x_blk, lambda n, j, r: (n, 0, 0, 0))
        w_spec = pl.BlockSpec(w_blk, lambda n, j, r: (0, j))
        o_spec = pl.BlockSpec(o_blk, lambda n, j, r: (n, r, j))

    # Explicit VMEM budget: 2 buffers per pipelined operand + the im2col
    # scratch + headroom.  Stays within v5e/v6e defaults raised, < v7x 64 MiB.
    blk_bytes = (2 * (Hp * Wp * Cinp * 2) + 2 * (Kfold * tn * 2)
                 + 2 * (tM * tn * 4) + tM * Kfold * 2)
    vmem_limit = int(min(max(blk_bytes + (8 << 20), 32 << 20), 60 << 20))

    flops = 2 * N * Hop * Wo * Kfold * Coutp
    out_pad = pl.pallas_call(
        functools.partial(conv_fold_kernel, kH=kH, kW=kW, tHo=tHo, Wo=Wo,
                          Cinp=Cinp, stride=stride),
        grid=grid,
        in_specs=[x_spec, w_spec],
        out_specs=o_spec,
        out_shape=jax.ShapeDtypeStruct((N, Hop * Wo, Coutp), jnp.float32),
        scratch_shapes=[pltpu.VMEM((tM, Kfold), jnp.bfloat16)],
        compiler_params=pltpu.CompilerParams(
            dimension_semantics=("parallel", "parallel", "parallel"),
            vmem_limit_bytes=vmem_limit),
        cost_estimate=pl.CostEstimate(flops=flops, transcendentals=0,
                                      bytes_accessed=x_bytes + w_bytes + o_bytes),
    )(x_pad, w_fold)

    # Kernel output is lane-dense NHWC-flat; convert back to NCHW only at the
    # module boundary to match PyTorch (skip this if the model runs NHWC).
    out = (out_pad.reshape(N, Hop, Wo, Coutp)[:, :Ho, :, :Cout]
           .transpose(0, 3, 1, 2))
    return out, mixed_weight


def reference_forward(x, weights, alpha, bits, stride=1, padding=1):
    """Pure-JAX f32 reference mirroring the PyTorch forward."""
    sw = jax.nn.softmax(alpha)
    mixed = jnp.zeros_like(weights[0])
    for i, bit in enumerate(bits):
        w = weights[i]
        std = jnp.std(w, ddof=1)
        step = gaussian_steps[bit] * std
        lvls = 2.0 ** bit / 2.0
        y = (jnp.round(w / step + 0.5) - 0.5) * step
        y = jnp.clip(y, -(lvls - 0.5) * step, (lvls - 0.5) * step)
        mixed = mixed + sw[i] * y
    out = jax.lax.conv_general_dilated(
        x, mixed, window_strides=(stride, stride),
        padding=((padding, padding), (padding, padding)),
        dimension_numbers=('NCHW', 'OIHW', 'NCHW'))
    return out, mixed


if __name__ == "__main__":
    bits = [2, 4, 8]
    inplane, outplane = 4, 8
    kH = kW = 3
    N, H, W = 2, 16, 16

    key = jax.random.PRNGKey(0)
    k_x, k_w = jax.random.split(key)
    x = jax.random.normal(k_x, (N, inplane, H, W), jnp.float32)
    # One conv weight per candidate bit-width (bias=False as asserted in module)
    weights = 0.1 * jax.random.normal(
        k_w, (len(bits), outplane, inplane, kH, kW), jnp.float32)
    alpha = jnp.full((len(bits),), 0.01, jnp.float32)

    out, mixed_w = mix_quant_conv2d(x, weights, alpha, bits, stride=1, padding=1)
    out = jax.block_until_ready(out)

    ref_out, ref_mixed = reference_forward(x, weights, alpha, bits,
                                           stride=1, padding=1)
    assert out.shape == (N, outplane, H, W)
    # Quantize+mix kernel is pure f32 with the same divide formula -> tight.
    assert jnp.allclose(mixed_w, ref_mixed, atol=1e-5, rtol=1e-5), \
        f"mixed weight max err {jnp.max(jnp.abs(mixed_w - ref_mixed))}"
    # Conv uses bf16 MXU operands (f32 accumulation) -> compare to the f32
    # reference with a correspondingly looser tolerance.
    # TODO(synk): PyTorch computes the conv in f32; keep bf16 operands only if
    # the NAS/training recipe tolerates ~1e-2 relative error.
    assert jnp.allclose(out, ref_out, atol=2e-2, rtol=2e-2), \
        f"conv max err {jnp.max(jnp.abs(out - ref_out))}"
    print("KERNEL_OK")
</pallas_src>

<mosaic_0001>
module attributes {stable_mosaic.version = 11 : i64} {
  func.func @mix_quant_weight_kernel(%arg0: i32, %arg1: memref<3x3xf32, #tpu.memory_space<smem>>, %arg2: memref<3x8x128xf32, #tpu.memory_space<vmem>>, %arg3: memref<8x128xf32, #tpu.memory_space<vmem>>) attributes {dimension_semantics = [#tpu.dimension_semantics<parallel>], iteration_bounds = array<i64: 1>, scalar_prefetch = 0 : i64, scratch_operands = 0 : i64, tpu.core_type = #tpu.core_type<tc>, window_params = [{transform_indices = @transform_0, window_bounds = array<i64: 3, 3>}, {transform_indices = @transform_1, window_bounds = array<i64: 3, 8, 128>}, {transform_indices = @transform_2, window_bounds = array<i64: 8, 128>}]} {
    %cst = arith.constant 0.000000e+00 : f32
    %0 = vector.broadcast %cst : f32 to vector<8x128xf32>
    %c0 = arith.constant 0 : index
    %c0_0 = arith.constant 0 : index
    %1 = memref.load %arg1[%c0, %c0_0] : memref<3x3xf32, #tpu.memory_space<smem>>
    %c0_1 = arith.constant 0 : index
    %c1 = arith.constant 1 : index
    %2 = memref.load %arg1[%c0_1, %c1] : memref<3x3xf32, #tpu.memory_space<smem>>
    %c0_2 = arith.constant 0 : index
    %c2 = arith.constant 2 : index
    %3 = memref.load %arg1[%c0_2, %c2] : memref<3x3xf32, #tpu.memory_space<smem>>
    %c0_3 = arith.constant 0 : index
    %c0_4 = arith.constant 0 : index
    %c0_5 = arith.constant 0 : index
    %4 = vector.load %arg2[%c0_3, %c0_4, %c0_5] : memref<3x8x128xf32, #tpu.memory_space<vmem>>, vector<1x8x128xf32>
    %5 = vector.shape_cast %4 : vector<1x8x128xf32> to vector<8x128xf32>
    %6 = vector.broadcast %1 : f32 to vector<8x128xf32>
    %7 = arith.divf %5, %6 : vector<8x128xf32>
    %cst_6 = arith.constant 5.000000e-01 : f32
    %8 = vector.broadcast %cst_6 : f32 to vector<8x128xf32>
    %9 = arith.addf %7, %8 : vector<8x128xf32>
    %10 = math.roundeven %9 : vector<8x128xf32>
    %cst_7 = arith.constant 5.000000e-01 : f32
    %11 = vector.broadcast %cst_7 : f32 to vector<8x128xf32>
    %12 = arith.subf %10, %11 : vector<8x128xf32>
    %13 = vector.broadcast %1 : f32 to vector<8x128xf32>
    %14 = arith.mulf %12, %13 : vector<8x128xf32>
    %cst_8 = arith.constant 0.000000e+00 : f32
    %15 = arith.subf %cst_8, %2 : f32
    %16 = vector.broadcast %15 : f32 to vector<8x128xf32>
    %17 = arith.maximumf %16, %14 : vector<8x128xf32>
    %18 = vector.broadcast %2 : f32 to vector<8x128xf32>
    %19 = arith.minimumf %18, %17 : vector<8x128xf32>
    %20 = vector.broadcast %3 : f32 to vector<8x128xf32>
    %21 = arith.mulf %20, %19 : vector<8x128xf32>
    %22 = arith.addf %0, %21 : vector<8x128xf32>
    %c1_9 = arith.constant 1 : index
    %c0_10 = arith.constant 0 : index
    %23 = memref.load %arg1[%c1_9, %c0_10] : memref<3x3xf32, #tpu.memory_space<smem>>
    %c1_11 = arith.constant 1 : index
    %c1_12 = arith.constant 1 : index
    %24 = memref.load %arg1[%c1_11, %c1_12] : memref<3x3xf32, #tpu.memory_space<smem>>
    %c1_13 = arith.constant 1 : index
    %c2_14 = arith.constant 2 : index
    %25 = memref.load %arg1[%c1_13, %c2_14] : memref<3x3xf32, #tpu.memory_space<smem>>
    %c1_15 = arith.constant 1 : index
    %c0_16 = arith.constant 0 : index
    %c0_17 = arith.constant 0 : index
    %26 = vector.load %arg2[%c1_15, %c0_16, %c0_17] : memref<3x8x128xf32, #tpu.memory_space<vmem>>, vector<1x8x128xf32>
    %27 = vector.shape_cast %26 : vector<1x8x128xf32> to vector<8x128xf32>
    %28 = vector.broadcast %23 : f32 to vector<8x128xf32>
    %29 = arith.divf %27, %28 : vector<8x128xf32>
    %cst_18 = arith.constant 5.000000e-01 : f32
    %30 = vector.broadcast %cst_18 : f32 to vector<8x128xf32>
    %31 = arith.addf %29, %30 : vector<8x128xf32>
    %32 = math.roundeven %31 : vector<8x128xf32>
    %cst_19 = arith.constant 5.000000e-01 : f32
    %33 = vector.broadcast %cst_19 : f32 to vector<8x128xf32>
    %34 = arith.subf %32, %33 : vector<8x128xf32>
    %35 = vector.broadcast %23 : f32 to vector<8x128xf32>
    %36 = arith.mulf %34, %35 : vector<8x128xf32>
    %cst_20 = arith.constant 0.000000e+00 : f32
    %37 = arith.subf %cst_20, %24 : f32
    %38 = vector.broadcast %37 : f32 to vector<8x128xf32>
    %39 = arith.maximumf %38, %36 : vector<8x128xf32>
    %40 = vector.broadcast %24 : f32 to vector<8x128xf32>
    %41 = arith.minimumf %40, %39 : vector<8x128xf32>
    %42 = vector.broadcast %25 : f32 to vector<8x128xf32>
    %43 = arith.mulf %42, %41 : vector<8x128xf32>
    %44 = arith.addf %22, %43 : vector<8x128xf32>
    %c2_21 = arith.constant 2 : index
    %c0_22 = arith.constant 0 : index
    %45 = memref.load %arg1[%c2_21, %c0_22] : memref<3x3xf32, #tpu.memory_space<smem>>
    %c2_23 = arith.constant 2 : index
    %c1_24 = arith.constant 1 : index
    %46 = memref.load %arg1[%c2_23, %c1_24] : memref<3x3xf32, #tpu.memory_space<smem>>
    %c2_25 = arith.constant 2 : index
    %c2_26 = arith.constant 2 : index
    %47 = memref.load %arg1[%c2_25, %c2_26] : memref<3x3xf32, #tpu.memory_space<smem>>
    %c2_27 = arith.constant 2 : index
    %c0_28 = arith.constant 0 : index
    %c0_29 = arith.constant 0 : index
    %48 = vector.load %arg2[%c2_27, %c0_28, %c0_29] : memref<3x8x128xf32, #tpu.memory_space<vmem>>, vector<1x8x128xf32>
    %49 = vector.shape_cast %48 : vector<1x8x128xf32> to vector<8x128xf32>
    %50 = vector.broadcast %45 : f32 to vector<8x128xf32>
    %51 = arith.divf %49, %50 : vector<8x128xf32>
    %cst_30 = arith.constant 5.000000e-01 : f32
    %52 = vector.broadcast %cst_30 : f32 to vector<8x128xf32>
    %53 = arith.addf %51, %52 : vector<8x128xf32>
    %54 = math.roundeven %53 : vector<8x128xf32>
    %cst_31 = arith.constant 5.000000e-01 : f32
    %55 = vector.broadcast %cst_31 : f32 to vector<8x128xf32>
    %56 = arith.subf %54, %55 : vector<8x128xf32>
    %57 = vector.broadcast %45 : f32 to vector<8x128xf32>
    %58 = arith.mulf %56, %57 : vector<8x128xf32>
    %cst_32 = arith.constant 0.000000e+00 : f32
    %59 = arith.subf %cst_32, %46 : f32
    %60 = vector.broadcast %59 : f32 to vector<8x128xf32>
    %61 = arith.maximumf %60, %58 : vector<8x128xf32>
    %62 = vector.broadcast %46 : f32 to vector<8x128xf32>
    %63 = arith.minimumf %62, %61 : vector<8x128xf32>
    %64 = vector.broadcast %47 : f32 to vector<8x128xf32>
    %65 = arith.mulf %64, %63 : vector<8x128xf32>
    %66 = arith.addf %44, %65 : vector<8x128xf32>
    %c0_33 = arith.constant 0 : index
    %c0_34 = arith.constant 0 : index
    %67 = vector.load %arg3[%c0_33, %c0_34] : memref<8x128xf32, #tpu.memory_space<vmem>>, vector<8x128xf32>
    tpu.vector_store %arg3[%c0_33, %c0_34], %66 {strides = array<i32>} : memref<8x128xf32, #tpu.memory_space<vmem>>, vector<8x128xf32>,
    return
  }
  func.func @transform_0(%arg0: i32) -> (i32, i32) {
    %c0_i32 = arith.constant 0 : i32
    %c0_i32_0 = arith.constant 0 : i32
    %c0_i32_1 = arith.constant 0 : i32
    return %c0_i32, %c0_i32_0 : i32, i32
  }
  func.func @transform_1(%arg0: i32) -> (i32, i32, i32) {
    %c0_i32 = arith.constant 0 : i32
    %c0_i32_0 = arith.constant 0 : i32
    %c0_i32_1 = arith.constant 0 : i32
    return %c0_i32, %arg0, %c0_i32_0 : i32, i32, i32
  }
  func.func @transform_2(%arg0: i32) -> (i32, i32) {
    %c0_i32 = arith.constant 0 : i32
    %c0_i32_0 = arith.constant 0 : i32
    return %arg0, %c0_i32 : i32, i32
  }
}

</mosaic_0001>

<bundles_post_ra>
// kernel: tpu_custom_call.1
= control target key start
LH: loop header
LB: loop body
LE: loop exit
PB: predicated region body
PF: predicated region fallthrough
CT: control target
= control target key end

     0   :  { %7 = vsyncpa [#allocation5], 0  ;;  %s278_s0 = inlined_call_operand.hbm [shape: f32[3,3], index: 0, kind: input, shape index: {}]   ;;  %s279_s1 = inlined_call_operand.hbm [shape: f32[3,8,128], index: 1, kind: input, shape index: {}]   ;;  %s280_s2 = inlined_call_operand.hbm [shape: f32[8,128], index: 2, kind: output, shape index: {}]  }
   0x1   :  { %8 = vsyncpa [#allocation3], 0 }
   0x2   :  { %9 = vsyncpa [#allocation4], 0  ;;  %s138_s11 = scalar_lea.hbm %s278_s0, 64 }
   0x3   :  { %p139_p0 = scmp.ne.s32.totalorder %s278_s0, %s138_s11  ;;  %p142_p1 = scmp.lt.u32.totalorder %s138_s11, %s278_s0 }
   0x5   :  { %p144_p2 = pnand %p142_p1, %p139_p0 }
   0x7   :  { %147 = shalt.err (!%p144_p2)
}
   0x8   :  { %s198_s16 = smov [#allocation2]   ;;  %s199_s19 = smov [#allocation6]  }
   0x9   :  { %17 = dma.hbm_to_smem %s278_s0, 64, %s198_s16, [#allocation5]  }
   0xa   :  { %s23_s20 = sshll.u32 %s199_s19, 4  ;;  %s148_s23 = scalar_lea.hbm %s279_s1, 384  ;;  %s24_s20 = int_to_ptr.vmem [resolvable:$true] %s23_s20 }
   0xb   :  { %p149_p3 = scmp.ne.s32.totalorder %s279_s1, %s148_s23  ;;  %p152_p4 = scmp.lt.u32.totalorder %s148_s23, %s279_s1 }
   0xd   :  { %p154_p5 = pnand %p152_p4, %p149_p3 }
   0xf   :  { %157 = shalt.err (!%p154_p5)
}
  0x10   :  { %s158_s28 = scalar_lea.vmem %s24_s20, 384  ;;  %p163_p7 = scmp.lt.s32.totalorder %s24_s20, %s24_s20 }
  0x11   :  { %p159_p6 = scmp.ne.s32.totalorder %s24_s20, %s158_s28  ;;  %p164_p8 = scmp.lt.s32.totalorder %s158_s28, %s158_s28 }
  0x13   :  { %p165_p9 = por %p164_p8, %p163_p7 }
  0x15   :  { %p166_p10 = pnand %p165_p9, %p159_p6 }
  0x17   :  { %169 = shalt.err (!%p166_p10)
}
  0x18   :  { %s200_s0 = smov 128   ;;  %s201_s29 = smov 8  }
  0x19   :  { %29 = dma.hbm_to_vmem [thread:$0]  %s279_s1, 384, %s24_s20, [#allocation3], %s200_s0, %s200_s0, %s201_s29  }
  0x1a   :  { %192 = dma.done.wait [#allocation5], 64  }
  0x1b   :  { %193 = vsyncadd [#allocation5], 4294967232 }
  0x1c   :  { %194 = dma.done.wait [#allocation3], 384  }
  0x1d   :  { %195 = vsyncadd [#allocation3], 4294966912 }
  0x1e   :  { %36 = sfence }
  0x1f   :  { %s242_s4 = sld [smem:[#allocation2]]  ;;  %s251_s1 = sld [smem:[#allocation2 + $0x1]]  ;;  %v40_v3 = vld [vmem:[#allocation6] sm:$0xff]  ;;  %v60_v4 = vld [vmem:[#allocation6 + $0x8] sm:$0xff]  ;;  %v80_v8 = vld [vmem:[#allocation6 + $0x10] sm:$0xff] }
  0x20   :  { %s244_s5 = sld [smem:[#allocation2 + $0x80]]  ;;  %s253_s7 = sld [smem:[#allocation2 + $0x81]] }
  0x21   :  { %s246_s6 = sld [smem:[#allocation2 + $0x100]]  ;;  %s255_s8 = sld [smem:[#allocation2 + $0x101]] }
  0x22   :  { %s257_s9 = sld [smem:[#allocation2 + $0x2]]  ;;  %s202_s15 = smov [#allocation7]  }
  0x23   :  { %s118_s11 = sld [smem:[#allocation2 + $0x82]]  ;;  %s103_s16 = sshll.u32 %s202_s15, 4  ;;  %s104_s16 = int_to_ptr.vmem [resolvable:$true] %s103_s16 }
  0x24   :  { %s122_s13 = sld [smem:[#allocation2 + $0x102]]  ;;  %s170_s17 = scalar_lea.vmem %s104_s16, 128 }
  0x25   :  { %v41_v0 = vstv %s242_s4  ;;  %s48_s10 = ssub.f32 0.0, %s251_s1  ;;  %v51_v23 = vstv %s251_s1  ;;  %p171_p11 = scmp.ne.s32.totalorder %s104_s16, %s170_s17 }
  0x26   :  { %132 = vrcp.f32 %v41_v0  ;;  %v61_v1 = vstv %s244_s5  ;;  %s68_s12 = ssub.f32 0.0, %s253_s7  ;;  %v71_v27 = vstv %s253_s7  ;;  %p175_p12 = scmp.lt.s32.totalorder %s104_s16, %s104_s16 }
  0x27   :  { %134 = vrcp.f32 %v61_v1  ;;  %v81_v2 = vstv %s246_s6  ;;  %s88_s14 = ssub.f32 0.0, %s255_s8  ;;  %v49_v18 = vstv %s48_s10  ;;  %v91_v34 = vstv %s255_s8  ;;  %p176_p13 = scmp.lt.s32.totalorder %s170_s17, %s170_s17 }
  0x28   :  { %136 = vrcp.f32 %v81_v2  ;;  %v69_v22 = vstv %s68_s12  ;;  %v53_v29 = vstv %s257_s9 }
  0x29   :  { %v89_v28 = vstv %s88_s14  ;;  %v73_v33 = vstv %s118_s11  ;;  %p177_p0 = por %p176_p13, %p175_p12 }
  0x2a   :  { %v93_v38 = vstv %s122_s13 }
  0x2b   :  { %p178_p1 = pnand %p177_p0, %p171_p11 }
  0x30   :  { %v133_v5 = vpop.eup %132 }
  0x31   :  { %v135_v6 = vpop.eup %134  ;;  %v43_v7 = vmul.f32 %v133_v5, %v40_v3 }
  0x32   :  { %v63_v9 = vmul.f32 %v135_v6, %v60_v4  ;;  %v137_v10 = vpop.eup %136 }
  0x33   :  { %v44_v11 = vadd.f32 0.5, %v43_v7  ;;  %v83_v13 = vmul.f32 %v137_v10, %v80_v8 }
  0x34   :  { %v64_v12 = vadd.f32 0.5, %v63_v9 }
  0x35   :  { %v124_v14 = vround.rtne.f32 %v44_v11  ;;  %v84_v16 = vadd.f32 0.5, %v83_v13 }
  0x36   :  { %v125_v15 = vround.rtne.f32 %v64_v12 }
  0x37   :  { %v115_v17 = vadd.f32 -0.5, %v124_v14  ;;  %v126_v20 = vround.rtne.f32 %v84_v16 }
  0x38   :  { %v119_v19 = vadd.f32 -0.5, %v125_v15 }
  0x39   :  { %v47_v21 = vmul.f32 %v115_v17, %v41_v0  ;;  %v123_v25 = vadd.f32 -0.5, %v126_v20 }
  0x3a   :  { %v67_v24 = vmul.f32 %v119_v19, %v61_v1 }
  0x3b   :  { %v50_v26 = vmax.f32 %v49_v18, %v47_v21  ;;  %v87_v31 = vmul.f32 %v123_v25, %v81_v2 }
  0x3c   :  { %v70_v30 = vmax.f32 %v69_v22, %v67_v24 }
  0x3d   :  { %v52_v32 = vmin.f32 %v51_v23, %v50_v26  ;;  %v90_v36 = vmax.f32 %v89_v28, %v87_v31 }
  0x3e   :  { %v72_v35 = vmin.f32 %v71_v27, %v70_v30 }
  0x3f   :  { %v54_v37 = vmul.f32 %v53_v29, %v52_v32  ;;  %v92_v40 = vmin.f32 %v91_v34, %v90_v36 }
  0x40   :  { %v74_v39 = vmul.f32 %v73_v33, %v72_v35 }
  0x41   :  { %v94_v42 = vmul.f32 %v93_v38, %v92_v40 }
  0x42   :  { %v75_v41 = vadd.f32 %v74_v39, %v54_v37 }
  0x44   :  { %v95_v43 = vadd.f32 %v94_v42, %v75_v41 }
  0x46   :  { %96 = vst [vmem:[#allocation7] sm:$0xff] %v95_v43 }
  0x47   :  { %181 = shalt.err (!%p178_p1)
}
  0x48   :  { %s182_s20 = scalar_lea.hbm %s280_s2, 128 }
  0x49   :  { %p183_p2 = scmp.ne.s32.totalorder %s280_s2, %s182_s20  ;;  %p186_p3 = scmp.lt.u32.totalorder %s182_s20, %s280_s2 }
  0x4b   :  { %p188_p4 = pnand %p186_p3, %p183_p2 }
  0x4d   :  { %191 = shalt.err (!%p188_p4)
}
  0x4e   :  { %106 = dma.vmem_to_hbm [thread:$0]  %s104_s16, 128, %s280_s2, [#allocation4]  }
  0x4f   :  { %196 = dma.done.wait [#allocation4], 128  }
  0x50   :  { %197 = vsyncadd [#allocation4], 4294967168 }
  0x51   :  { %110 = vsyncpa [#allocation3], 1 }
  0x52   :  { %111 = vsyncpa [#allocation4], 1 }
  0x53   :  { %112 = vsyncpa [#allocation5], 1 }

</bundles_post_ra>
